<compile_context>
chip_gen: v6e
topology: v6e:2x2x1
jax: 0.10.0
libtpu: 0.0.40
codegen_flags: <defaults>
</compile_context>

<pallas_src>
import functools

import jax
import jax.numpy as jnp
from jax.experimental import pallas as pl
from jax.experimental.pallas import tpu as pltpu

# ----------------------------- small configuration --------------------------------
B = 2                    # batch (>=2 also keeps both v7x TensorCores busy)
IMG_H = IMG_W = 128      # padded image size (divisible by all strides)
C_TOWER = 32             # FCOS tower channels feeding the controller (cfg default: 256)
MASK_CHANNELS = 8        # cfg.MODEL.CONDINST.MASK_HEAD.CHANNELS
MASK_BRANCH_STRIDE = 8   # mask_branch.out_stride
FPN_STRIDE = 8           # stride of the (single, stubbed) FPN level P3
SOI = 64.0               # sizes_of_interest[fpn_level 0]
MASK_OUT_STRIDE = 4      # cfg.MODEL.CONDINST.MASK_OUT_STRIDE (upsample not implemented)
GROUP_SIZE = 8           # instances processed per mask-head grid step (8 sublane groups)

WEIGHT_NUMS = [(MASK_CHANNELS + 2) * MASK_CHANNELS,   # 80
               MASK_CHANNELS * MASK_CHANNELS,         # 64
               MASK_CHANNELS * 1]                     # 8
BIAS_NUMS = [MASK_CHANNELS, MASK_CHANNELS, 1]         # 8, 8, 1
NUM_GEN_PARAMS = sum(WEIGHT_NUMS) + sum(BIAS_NUMS)    # 169 (mask_head.num_gen_params)


# ===================================================================================
# Kernel 1: pixel normalization  (self.normalizer)
#   One whole-image (C, HW) block per grid step; the 3 per-channel (mean, 1/std)
#   constants are baked as immediates, so the only DMA traffic is the image itself.
# ===================================================================================
def _normalize_kernel(img_ref, o_ref, *, mean, inv_std):
    # img_ref/o_ref: (1, C, tile) f32; channels on sublanes (C == full dim), pixels on lanes
    for c in range(len(mean)):                     # static unroll over the 3 channels
        o_ref[0, c:c + 1, :] = (img_ref[0, c:c + 1, :] - mean[c]) * inv_std[c]


def normalize_images(images, pixel_mean, pixel_std, tile_hw=None):
    Bi, C, H, W = images.shape
    HW = H * W
    tile_hw = HW if tile_hw is None else tile_hw
    assert HW % tile_hw == 0 and (tile_hw == HW or tile_hw % 128 == 0)
    mean = tuple(float(v) for v in pixel_mean)
    inv_std = tuple(1.0 / float(v) for v in pixel_std)
    assert len(mean) == C and len(inv_std) == C
    imgs = images.reshape(Bi, C, HW)
    out = pl.pallas_call(
        functools.partial(_normalize_kernel, mean=mean, inv_std=inv_std),
        out_shape=jax.ShapeDtypeStruct((Bi, C, HW), jnp.float32),
        grid=(Bi, HW // tile_hw),
        in_specs=[pl.BlockSpec((1, C, tile_hw), lambda b, t: (b, 0, t))],
        out_specs=pl.BlockSpec((1, C, tile_hw), lambda b, t: (b, 0, t)),
        compiler_params=pltpu.CompilerParams(
            dimension_semantics=("parallel", "parallel")),
    )(imgs)
    return out.reshape(Bi, C, H, W)


# ===================================================================================
# Kernel 2: controller = nn.Conv2d(C_TOWER, NUM_GEN_PARAMS, k=3, stride=1, padding=1)
#   The feature map is zero-padded and flattened to Hp*Wp (+1 guard element each end).
#   For tap (ky, kx) the input of output flat position j is x[1 + Wp + (ky-1)*Wp +
#   (kx-1) + j] -> 9 static lane slices are written into a (9*C, HWp) VMEM im2col
#   scratch and ONE K=9*C f32 MXU dot produces the whole (P, HWp) output block.
#   Output stays lane-dense (P, Hf*Wp) with pixels on lanes; the two garbage border
#   columns per row are never copied out -- consumers index with the Wp stride.
# ===================================================================================
def _controller_kernel(x_ref, w_ref, b_ref, o_ref, col_ref, *, Wp):
    # x_ref: (1, C, Hp*Wp + 2) f32 flat padded feature of this image
    # w_ref: (P, 9*C) f32   b_ref: (P, 1) f32
    # col_ref: (9*C, HWp) f32 VMEM im2col scratch
    # o_ref: (1, P, HWp) f32  (lane-dense, HWp = Hf*Wp)
    C = x_ref.shape[1]
    HWp = o_ref.shape[2]
    for t in range(9):                              # static unroll over the 3x3 taps
        ky, kx = t // 3, t % 3
        s = 1 + Wp + (ky - 1) * Wp + (kx - 1)
        col_ref[t * C:(t + 1) * C, :] = x_ref[0, :, s:s + HWp]
    o_ref[0] = (jnp.dot(w_ref[...], col_ref[...],
                        preferred_element_type=jnp.float32) + b_ref[...])


def controller_conv(feat, weight, bias):
    """feat: (B, C, Hf, Wf) NCHW; weight: (P, C, 3, 3); bias: (P,).

    Returns the lane-dense (B, P, Hf, Wp) conv output (Wp = Wf + 2).  Valid pixels are
    columns 1..Wf; columns 0 and Wf+1 are wrap-around garbage and must not be read
    (they are never copied back out separately -> no post-kernel crop HBM round trip).
    """
    Bf, C, Hf, Wf = feat.shape
    P = weight.shape[0]
    Hp, Wp = Hf + 2, Wf + 2
    HWp = Hf * Wp
    L2 = Hp * Wp + 2
    xpad = jnp.pad(feat, ((0, 0), (0, 0), (1, 1), (1, 1))).reshape(Bf, C, Hp * Wp)
    xflat = jnp.pad(xpad, ((0, 0), (0, 0), (1, 1))).astype(jnp.float32)      # (B, C, L2)
    # weight -> (P, 9*C): tap-major, channel-minor -- matches the im2col scratch rows.
    # Kept in f32: the controller output is the 169 dynamic-conv parameters, which are
    # precision sensitive downstream (bf16 operands are a further option if mask AP allows).
    w2d = jnp.transpose(weight, (0, 2, 3, 1)).reshape(P, 9 * C).astype(jnp.float32)
    b2d = bias.reshape(P, 1).astype(jnp.float32)

    out = pl.pallas_call(
        functools.partial(_controller_kernel, Wp=Wp),
        out_shape=jax.ShapeDtypeStruct((Bf, P, HWp), jnp.float32),
        grid=(Bf,),
        in_specs=[
            pl.BlockSpec((1, C, L2), lambda b: (b, 0, 0)),
            pl.BlockSpec((P, 9 * C), lambda b: (0, 0)),      # weights stay resident
            pl.BlockSpec((P, 1), lambda b: (0, 0)),
        ],
        out_specs=pl.BlockSpec((1, P, HWp), lambda b: (b, 0, 0)),
        scratch_shapes=[pltpu.VMEM((9 * C, HWp), jnp.float32)],
        compiler_params=pltpu.CompilerParams(dimension_semantics=("parallel",)),
    )(xflat, w2d, b2d)
    return out.reshape(Bf, P, Hf, Wp)


# ===================================================================================
# Kernel 3: dynamic mask head (mask_heads_forward_with_coords + sigmoid, test path)
#   One grid step = GROUP_SIZE instances of the same image x one lane chunk of pixels.
#   Everything runs in the flat (G*Cm, THW) layout (row r = g*Cm + channel i).
# ===================================================================================
def _mask_head_kernel(group_im_ref, cols_ref, mf_ref, w1f_ref, w2_ref, o_ref,
                      *, Wm, stride):
    del group_im_ref          # consumed only by the mask_feats index_map (image select)
    Cm, THW = mf_ref.shape[1], mf_ref.shape[2]
    G = o_ref.shape[0]

    # compute_locations(Hm, Wm, stride) for this lane chunk, generated in-kernel.
    base = pl.program_id(1) * THW
    idx = base + jax.lax.broadcasted_iota(jnp.int32, (1, THW), 1)
    xs = (idx % Wm).astype(jnp.float32) * float(stride) + float(stride // 2)
    ys = (idx // Wm).astype(jnp.float32) * float(stride) + float(stride // 2)

    # one packed block for every small per-row parameter (single DMA stream)
    cols = cols_ref[0]                                     # (G*Cm, 9) f32
    cx, cy, inv_soi = cols[:, 0:1], cols[:, 1:2], cols[:, 2:3]
    w1cx, w1cy = cols[:, 3:4], cols[:, 4:5]
    b1, b2 = cols[:, 5:6], cols[:, 6:7]
    w3, b3oh = cols[:, 7:8], cols[:, 8:9]

    rel_x = (cx - xs) * inv_soi                            # (G*Cm, THW), VPU
    rel_y = (cy - ys) * inv_soi

    # layer 1: ONE shared-feature MXU dot (M = G*Cm, shared RHS) + coord columns on VPU
    h = jnp.dot(w1f_ref[0], mf_ref[0], preferred_element_type=jnp.float32)
    h = jnp.maximum(h + w1cx * rel_x + w1cy * rel_y + b1, 0.0)
    # layer 2: block-diagonal stacked weights -> ONE MXU dot (M = K = G*Cm)
    h = jnp.dot(w2_ref[0], h.astype(jnp.bfloat16), preferred_element_type=jnp.float32)
    h = jnp.maximum(h + b2, 0.0)
    # layer 3: per-row scale + per-instance sublane reduce (b3 folded in as a one-hot
    # column so no extra stream is needed), sigmoid on the EUP.
    logits = jnp.sum((w3 * h + b3oh).reshape(G, Cm, THW), axis=1)
    o_ref[...] = jax.nn.sigmoid(logits)


def _parse_dynamic_params(params, Cm):
    # parse_dynamic_params: params layout is [w1 | w2 | w3 | b1 | b2 | b3]
    N = params.shape[0]
    s0, s1, s2 = WEIGHT_NUMS
    w1 = params[:, :s0].reshape(N, Cm, Cm + 2)
    w2 = params[:, s0:s0 + s1].reshape(N, Cm, Cm)
    w3 = params[:, s0 + s1:s0 + s1 + s2].reshape(N, 1, Cm)
    off = s0 + s1 + s2
    b1 = params[:, off:off + Cm].reshape(N, Cm, 1)
    b2 = params[:, off + Cm:off + 2 * Cm].reshape(N, Cm, 1)
    b3 = params[:, off + 2 * Cm:off + 2 * Cm + 1].reshape(N, 1, 1)
    return w1, w2, w3, b1, b2, b3


def dynamic_mask_head(mask_feats, params, im_inds, inst_locations, soi,
                      group_size=GROUP_SIZE, hw_tile=None):
    """mask_feats: (B, Cm, Hm, Wm); params: (N, 169); im_inds: (N,) int32 sorted by
    image (test-time Instances.cat order), with each GROUP of `group_size` consecutive
    instances belonging to ONE image; inst_locations: (N, 2) (x, y); soi: (N,).
    Returns (N, 1, Hm, Wm) sigmoid masks."""
    Bm, Cm, Hm, Wm = mask_feats.shape
    N = params.shape[0]
    G = group_size
    assert N % G == 0, "pad each image's proposals to a multiple of group_size"
    NG = N // G
    HW = Hm * Wm
    if hw_tile is None:
        hw_tile = HW if HW <= 2048 else 2048
    THW = hw_tile
    assert HW % THW == 0 and (THW == HW or THW % 128 == 0)

    # correctness guard: every group must share one im_ind (skip under tracing)
    im_grp = im_inds.reshape(NG, G)
    if not isinstance(im_inds, jax.core.Tracer):
        assert bool(jnp.all(im_grp == im_grp[:, :1])), \
            "each block of group_size consecutive instances must share an image index"
    group_im = im_grp[:, 0].astype(jnp.int32)

    mf = mask_feats.reshape(Bm, Cm, HW).astype(jnp.bfloat16)          # bf16 MXU operand

    w1, w2, w3, b1, b2, b3 = _parse_dynamic_params(params, Cm)
    w1c, w1f = w1[:, :, :2], w1[:, :, 2:]
    # layer-1 weights, flat rows (instance-major, channel-minor) -> (NG, G*Cm, Cm)
    w1f_flat = w1f.reshape(NG, G * Cm, Cm).astype(jnp.bfloat16)
    # layer-2 weights stacked block-diagonally -> one (G*Cm, G*Cm) matmul per group
    eye = jnp.eye(G, dtype=jnp.float32)
    w2_g = w2.reshape(NG, G, Cm, Cm)
    w2_bd = (w2_g[:, :, None, :, :] * eye[None, :, :, None, None])
    w2_bd = jnp.transpose(w2_bd, (0, 1, 3, 2, 4)).reshape(
        NG, G * Cm, G * Cm).astype(jnp.bfloat16)

    # pack ALL remaining small params into one (NG, G*Cm, 9) block:
    # [cx, cy, 1/soi, w1_x, w1_y, b1, b2, w3, b3*(i==0)]
    rep = lambda v: jnp.repeat(v.reshape(N, 1), Cm, axis=1)           # per-instance -> rows
    b3_oh = jnp.concatenate(
        [b3.reshape(N, 1), jnp.zeros((N, Cm - 1), params.dtype)], axis=1)
    cols = jnp.stack(
        [rep(inst_locations[:, 0]), rep(inst_locations[:, 1]), rep(1.0 / soi),
         w1c[:, :, 0], w1c[:, :, 1], b1[:, :, 0], b2[:, :, 0], w3[:, 0, :], b3_oh],
        axis=-1).reshape(NG, G * Cm, 9).astype(jnp.float32)

    grid_spec = pltpu.PrefetchScalarGridSpec(
        num_scalar_prefetch=1,            # group_im -> SMEM, drives mask_feats index_map
        grid=(NG, HW // THW),             # (instance groups, pixel/lane chunks)
        in_specs=[
            pl.BlockSpec((1, G * Cm, 9), lambda n, t, gi: (n, 0, 0)),        # packed params
            pl.BlockSpec((1, Cm, THW), lambda n, t, gi: (gi[n], 0, t)),      # mask_feats[im]
            pl.BlockSpec((1, G * Cm, Cm), lambda n, t, gi: (n, 0, 0)),       # w1 (feat cols)
            pl.BlockSpec((1, G * Cm, G * Cm), lambda n, t, gi: (n, 0, 0)),   # w2 block-diag
        ],
        out_specs=pl.BlockSpec((G, THW), lambda n, t, gi: (n, t)),           # lane-dense
    )
    out = pl.pallas_call(
        functools.partial(_mask_head_kernel, Wm=Wm, stride=MASK_BRANCH_STRIDE),
        out_shape=jax.ShapeDtypeStruct((N, HW), jnp.float32),
        grid_spec=grid_spec,
        compiler_params=pltpu.CompilerParams(
            dimension_semantics=("parallel", "parallel")),
    )(group_im, cols, mf, w1f_flat, w2_bd)
    return out.reshape(N, 1, Hm, Wm)


# ===================================================================================
# Stubs for the detectron2 sub-modules built in __init__
# ===================================================================================
def _stub_backbone_and_mask_branch(norm_images, key):
    # TODO(synk): real backbone is ResNet+FPN and mask_branch is a conv stack; stubbed
    #             with average pooling + deterministic 1x1 channel projections.
    Bi, C, H, W = norm_images.shape
    Hf, Wf = H // FPN_STRIDE, W // FPN_STRIDE
    pooled = norm_images.reshape(Bi, C, Hf, FPN_STRIDE, Wf, FPN_STRIDE).mean(axis=(3, 5))
    k1, k2 = jax.random.split(key)
    w_tower = jax.random.normal(k1, (C, C_TOWER), jnp.float32) * 0.02
    w_mask = jax.random.normal(k2, (C, MASK_CHANNELS), jnp.float32) * 0.01
    tower_feat = jnp.einsum("bchw,cd->bdhw", pooled, w_tower)        # (B, C_TOWER, Hf, Wf)

    Hm, Wm = H // MASK_BRANCH_STRIDE, W // MASK_BRANCH_STRIDE
    pooled_m = norm_images.reshape(Bi, C, Hm, MASK_BRANCH_STRIDE,
                                   Wm, MASK_BRANCH_STRIDE).mean(axis=(3, 5))
    mask_feats = jnp.einsum("bchw,cd->bdhw", pooled_m, w_mask)       # (B, Cm, Hm, Wm)
    return tower_feat, mask_feats


# ------------------------------ pure-JAX references -------------------------------
def _ref_controller(feat, weight, bias):
    out = jax.lax.conv_general_dilated(feat, weight, (1, 1), "SAME",
                                       dimension_numbers=("NCHW", "OIHW", "NCHW"),
                                       precision=jax.lax.Precision.HIGHEST)
    return out + bias.reshape(1, -1, 1, 1)


def _ref_mask_head(mask_feats, params, im_inds, inst_locations, soi):
    Bm, Cm, Hm, Wm = mask_feats.shape
    N = params.shape[0]
    HW = Hm * Wm
    xs = jnp.arange(Wm, dtype=jnp.float32) * MASK_BRANCH_STRIDE + MASK_BRANCH_STRIDE // 2
    ys = jnp.arange(Hm, dtype=jnp.float32) * MASK_BRANCH_STRIDE + MASK_BRANCH_STRIDE // 2
    yy, xx = jnp.meshgrid(ys, xs, indexing="ij")
    locs = jnp.stack([xx.reshape(-1), yy.reshape(-1)], axis=0)              # (2, HW)
    rel = (inst_locations[:, :, None] - locs[None]) / soi[:, None, None]    # (N, 2, HW)
    feats = mask_feats.reshape(Bm, Cm, HW)[im_inds]                         # (N, Cm, HW)
    x0 = jnp.concatenate([rel, feats], axis=1)                              # (N, Cm+2, HW)
    w1, w2, w3, b1, b2, b3 = _parse_dynamic_params(params, Cm)
    h = jnp.maximum(jnp.einsum("nij,njh->nih", w1, x0) + b1, 0.0)
    h = jnp.maximum(jnp.einsum("nij,njh->nih", w2, h) + b2, 0.0)
    logits = jnp.einsum("nij,njh->nih", w3, h) + b3
    return jax.nn.sigmoid(logits).reshape(N, 1, Hm, Wm)


# ===================================================================================
# Full (inference) forward path
# ===================================================================================
if __name__ == "__main__":
    key = jax.random.PRNGKey(0)
    k_img, k_ctrl, k_bb = jax.random.split(key, 3)

    # batched_inputs images, NCHW uint8-like values
    images = jax.random.uniform(k_img, (B, 3, IMG_H, IMG_W), jnp.float32, 0.0, 255.0)
    pixel_mean = (103.530, 116.280, 123.675)        # cfg.MODEL.PIXEL_MEAN
    pixel_std = (1.0, 1.0, 1.0)                     # cfg.MODEL.PIXEL_STD

    # controller: nn.Conv2d(C_TOWER, num_gen_params, 3, 1, 1); normal_(std=0.01), bias=0
    ctrl_w = jax.random.normal(k_ctrl, (NUM_GEN_PARAMS, C_TOWER, 3, 3), jnp.float32) * 0.01
    ctrl_b = jnp.zeros((NUM_GEN_PARAMS,), jnp.float32)

    # ---- forward ----
    norm = normalize_images(images, pixel_mean, pixel_std)                 # Pallas kernel 1
    norm_ref = ((images - jnp.array(pixel_mean).reshape(1, 3, 1, 1))
                / jnp.array(pixel_std).reshape(1, 3, 1, 1))
    assert float(jnp.max(jnp.abs(norm - norm_ref))) < 1e-4

    tower_feat, mask_feats = _stub_backbone_and_mask_branch(norm, k_bb)    # stubbed modules

    Hf, Wf = IMG_H // FPN_STRIDE, IMG_W // FPN_STRIDE
    top_feats = controller_conv(tower_feat, ctrl_w, ctrl_b)                # Pallas kernel 2
    # verification-only crop of the two garbage border columns (not on the hot path)
    top_ref = _ref_controller(tower_feat, ctrl_w, ctrl_b)
    top_crop = top_feats[:, :, :, 1:1 + Wf]
    rel_err = float(jnp.max(jnp.abs(top_crop - top_ref)) /
                    (jnp.max(jnp.abs(top_ref)) + 1e-6))
    assert rel_err < 5e-3, f"controller conv rel err {rel_err}"            # f32 MXU path

    # TODO(synk): FCOS proposal generator not implemented; fixed proposals, sorted by
    #             im_ind (the order Instances.cat(proposals) produces at test time),
    #             GROUP_SIZE proposals per image (keeps NG>=2 for v7x's two TCs).
    N_PER_IM = GROUP_SIZE
    N_INST = B * N_PER_IM
    im_inds = jnp.repeat(jnp.arange(B, dtype=jnp.int32), N_PER_IM)
    pidx = jnp.arange(N_INST, dtype=jnp.int32)
    fy = (pidx * 3) % Hf
    fx = (pidx * 5 + 2) % Wf
    inst_locations = jnp.stack(
        [fx.astype(jnp.float32) * FPN_STRIDE + FPN_STRIDE // 2,
         fy.astype(jnp.float32) * FPN_STRIDE + FPN_STRIDE // 2], axis=1)   # (N, 2) (x, y)
    soi = jnp.full((N_INST,), SOI, jnp.float32)                            # sizes_of_interest

    # pred_instances.mask_head_params: gather straight from the lane-dense controller
    # output using the Wp stride (column fx+1) -> no crop copy through HBM.
    mask_head_params = top_feats[im_inds, :, fy, fx + 1]                   # (N, 169)

    pred_global_masks = dynamic_mask_head(mask_feats, mask_head_params,
                                          im_inds, inst_locations, soi)    # Pallas kernel 3
    masks_ref = _ref_mask_head(mask_feats, mask_head_params, im_inds, inst_locations, soi)
    mask_err = float(jnp.max(jnp.abs(pred_global_masks - masks_ref)))
    assert mask_err < 0.03, f"mask head err {mask_err}"                    # bf16 MXU operands

    # postprocess threshold (aligned_bilinear upsample / resize skipped, see TODOs)
    pred_masks = (pred_global_masks > 0.5).astype(jnp.float32)

    jax.block_until_ready((pred_global_masks, pred_masks))
    assert pred_global_masks.shape == (N_INST, 1, IMG_H // MASK_BRANCH_STRIDE,
                                       IMG_W // MASK_BRANCH_STRIDE)
    print("KERNEL_OK")
</pallas_src>

<mosaic_0001>
module attributes {stable_mosaic.version = 11 : i64} {
  func.func @_normalize_kernel(%arg0: i32, %arg1: i32, %arg2: memref<1x3x16384xf32, #tpu.memory_space<vmem>>, %arg3: memref<1x3x16384xf32, #tpu.memory_space<vmem>>) attributes {dimension_semantics = [#tpu.dimension_semantics<parallel>, #tpu.dimension_semantics<parallel>], iteration_bounds = array<i64: 2, 1>, scalar_prefetch = 0 : i64, scratch_operands = 0 : i64, tpu.core_type = #tpu.core_type<tc>, window_params = [{transform_indices = @transform_0, window_bounds = array<i64: 1, 3, 16384>}, {transform_indices = @transform_1, window_bounds = array<i64: 1, 3, 16384>}]} {
    %c0 = arith.constant 0 : index
    %c0_0 = arith.constant 0 : index
    %c0_1 = arith.constant 0 : index
    %0 = vector.load %arg2[%c0, %c0_0, %c0_1] : memref<1x3x16384xf32, #tpu.memory_space<vmem>>, vector<1x1x16384xf32>
    %1 = vector.shape_cast %0 : vector<1x1x16384xf32> to vector<1x16384xf32>
    %cst = arith.constant 1.035300e+02 : f32
    %2 = vector.broadcast %cst : f32 to vector<1x16384xf32>
    %3 = arith.subf %1, %2 : vector<1x16384xf32>
    %cst_2 = arith.constant 1.000000e+00 : f32
    %4 = vector.broadcast %cst_2 : f32 to vector<1x16384xf32>
    %5 = arith.mulf %3, %4 : vector<1x16384xf32>
    %c0_3 = arith.constant 0 : index
    %c0_4 = arith.constant 0 : index
    %c0_5 = arith.constant 0 : index
    %6 = vector.load %arg3[%c0_3, %c0_4, %c0_5] : memref<1x3x16384xf32, #tpu.memory_space<vmem>>, vector<1x1x16384xf32>
    %7 = vector.shape_cast %6 : vector<1x1x16384xf32> to vector<1x16384xf32>
    %8 = vector.shape_cast %5 : vector<1x16384xf32> to vector<1x1x16384xf32>
    tpu.vector_store %arg3[%c0_3, %c0_4, %c0_5], %8 {strides = array<i32>} : memref<1x3x16384xf32, #tpu.memory_space<vmem>>, vector<1x1x16384xf32>,
    %c0_6 = arith.constant 0 : index
    %c1 = arith.constant 1 : index
    %c0_7 = arith.constant 0 : index
    %9 = vector.load %arg2[%c0_6, %c1, %c0_7] : memref<1x3x16384xf32, #tpu.memory_space<vmem>>, vector<1x1x16384xf32>
    %10 = vector.shape_cast %9 : vector<1x1x16384xf32> to vector<1x16384xf32>
    %cst_8 = arith.constant 1.162800e+02 : f32
    %11 = vector.broadcast %cst_8 : f32 to vector<1x16384xf32>
    %12 = arith.subf %10, %11 : vector<1x16384xf32>
    %cst_9 = arith.constant 1.000000e+00 : f32
    %13 = vector.broadcast %cst_9 : f32 to vector<1x16384xf32>
    %14 = arith.mulf %12, %13 : vector<1x16384xf32>
    %c0_10 = arith.constant 0 : index
    %c1_11 = arith.constant 1 : index
    %c0_12 = arith.constant 0 : index
    %15 = vector.load %arg3[%c0_10, %c1_11, %c0_12] : memref<1x3x16384xf32, #tpu.memory_space<vmem>>, vector<1x1x16384xf32>
    %16 = vector.shape_cast %15 : vector<1x1x16384xf32> to vector<1x16384xf32>
    %17 = vector.shape_cast %14 : vector<1x16384xf32> to vector<1x1x16384xf32>
    tpu.vector_store %arg3[%c0_10, %c1_11, %c0_12], %17 {strides = array<i32>} : memref<1x3x16384xf32, #tpu.memory_space<vmem>>, vector<1x1x16384xf32>,
    %c0_13 = arith.constant 0 : index
    %c2 = arith.constant 2 : index
    %c0_14 = arith.constant 0 : index
    %18 = vector.load %arg2[%c0_13, %c2, %c0_14] : memref<1x3x16384xf32, #tpu.memory_space<vmem>>, vector<1x1x16384xf32>
    %19 = vector.shape_cast %18 : vector<1x1x16384xf32> to vector<1x16384xf32>
    %cst_15 = arith.constant 1.236750e+02 : f32
    %20 = vector.broadcast %cst_15 : f32 to vector<1x16384xf32>
    %21 = arith.subf %19, %20 : vector<1x16384xf32>
    %cst_16 = arith.constant 1.000000e+00 : f32
    %22 = vector.broadcast %cst_16 : f32 to vector<1x16384xf32>
    %23 = arith.mulf %21, %22 : vector<1x16384xf32>
    %c0_17 = arith.constant 0 : index
    %c2_18 = arith.constant 2 : index
    %c0_19 = arith.constant 0 : index
    %24 = vector.load %arg3[%c0_17, %c2_18, %c0_19] : memref<1x3x16384xf32, #tpu.memory_space<vmem>>, vector<1x1x16384xf32>
    %25 = vector.shape_cast %24 : vector<1x1x16384xf32> to vector<1x16384xf32>
    %26 = vector.shape_cast %23 : vector<1x16384xf32> to vector<1x1x16384xf32>
    tpu.vector_store %arg3[%c0_17, %c2_18, %c0_19], %26 {strides = array<i32>} : memref<1x3x16384xf32, #tpu.memory_space<vmem>>, vector<1x1x16384xf32>,
    return
  }
  func.func @transform_0(%arg0: i32, %arg1: i32) -> (i32, i32, i32) {
    %c0_i32 = arith.constant 0 : i32
    %c0_i32_0 = arith.constant 0 : i32
    return %arg0, %c0_i32, %arg1 : i32, i32, i32
  }
  func.func @transform_1(%arg0: i32, %arg1: i32) -> (i32, i32, i32) {
    %c0_i32 = arith.constant 0 : i32
    %c0_i32_0 = arith.constant 0 : i32
    return %arg0, %c0_i32, %arg1 : i32, i32, i32
  }
}

</mosaic_0001>

<bundles_post_ra>
// kernel: tpu_custom_call.1
= control target key start
LH: loop header
LB: loop body
LE: loop exit
PB: predicated region body
PF: predicated region fallthrough
CT: control target
= control target key end

     0   :  { %s694_s6 = smov 0   ;;  %s696_s7 = smov 0   ;;  %s827_s0 = inlined_call_operand.vmem [shape: f32[2,3,16384], index: 0, kind: input, shape index: {}]   ;;  %s828_s1 = inlined_call_operand.vmem [shape: f32[2,3,16384], index: 1, kind: output, shape index: {}]  }
   0x1   :  { %s698_s8 = smov 0  }
   0x2 LB: > { %s23_s9 = sadd.s32 1, %s678_s7  ;;  %p485_p0 = scmp.ge.s32.totalorder %s682_s8, 1  ;;  %s682_s8 = sphi %s698_s8, %s11_s8   ;;  %s678_s7 = sphi %s696_s7, %s830_s7   ;;  %s674_s6 = sphi %s694_s6, %s829_s6  }
   0x3   : > { %p25_p1 = scmp.ge.s32.totalorder %s23_s9, 2  ;;  %p108_p2 = scmp.lt.s32.totalorder %s682_s8, 3 }
   0x5   : > { %s832_s9 = smov (%p25_p1, %s23_s9), 0  ;;  %p109_p3 = pnand %p485_p0, %p108_p2 }
   0x6   : > { %p137_p4 = scmp.lt.s32.totalorder (!%p109_p3), %s674_s6, 1 }
   0x7   : > { %112 = sbr.rel (%p109_p3) target bundleno = 65 (0x41), region = 24 }
   0xc   : > { %s834_s6 = smov (!%p137_p4, %s674_s6), 1 }
   0xd   : > { %s634_s10 = sshll.u32 %s834_s6, 9 }
   0xe   : > { %s715_s13 = scalar_lea.vmem %s827_s0, %s634_s10  ;;  %s720_s16 = scalar_lea.vmem %s828_s1, %s634_s10 }
   0xf   : > { %v156_v0 = vld [vmem:[%s715_s13] ss:$4 sm:$0xff]  ;;  %v536_v31 = vld [vmem:[%s715_s13 + $0x1] ss:$4 sm:$0xff]  ;;  %v584_v62 = vld [vmem:[%s715_s13 + $0x2] ss:$4 sm:$0xff] }
  0x10   : > { %v490_v1 = vld [vmem:[%s715_s13 + $0x20] ss:$4 sm:$0xff]  ;;  %v505_v3 = vadd.f32 -103.53, %v156_v0  ;;  %v537_v32 = vld [vmem:[%s715_s13 + $0x21] ss:$4 sm:$0xff] }
  0x11   : > { %v491_v2 = vld [vmem:[%s715_s13 + $0x40] ss:$4 sm:$0xff]  ;;  %v506_v4 = vadd.f32 -103.53, %v490_v1  ;;  %v552_v34 = vadd.f32 -116.28, %v536_v31 }
  0x12   : > { %v507_v5 = vadd.f32 -103.53, %v491_v2  ;;  %v492_v6 = vld [vmem:[%s715_s13 + $0x60] ss:$4 sm:$0xff]  ;;  %203 = vst [vmem:[%s720_s16] ss:$4 sm:$0xff] %v505_v3 }
  0x13   : > { %v493_v7 = vld [vmem:[%s715_s13 + $0x80] ss:$4 sm:$0xff]  ;;  %521 = vst [vmem:[%s720_s16 + $0x20] ss:$4 sm:$0xff] %v506_v4  ;;  %v508_v9 = vadd.f32 -103.53, %v492_v6 }
  0x14   : > { %v494_v8 = vld [vmem:[%s715_s13 + $0xa0] ss:$4 sm:$0xff]  ;;  %522 = vst [vmem:[%s720_s16 + $0x40] ss:$4 sm:$0xff] %v507_v5  ;;  %v509_v10 = vadd.f32 -103.53, %v493_v7 }
  0x15   : > { %v510_v11 = vadd.f32 -103.53, %v494_v8  ;;  %v495_v12 = vld [vmem:[%s715_s13 + $0xc0] ss:$4 sm:$0xff]  ;;  %523 = vst [vmem:[%s720_s16 + $0x60] ss:$4 sm:$0xff] %v508_v9 }
  0x16   : > { %v496_v13 = vld [vmem:[%s715_s13 + $0xe0] ss:$4 sm:$0xff]  ;;  %524 = vst [vmem:[%s720_s16 + $0x80] ss:$4 sm:$0xff] %v509_v10  ;;  %v511_v15 = vadd.f32 -103.53, %v495_v12 }
  0x17   : > { %v497_v14 = vld [vmem:[%s715_s13 + $0x100] ss:$4 sm:$0xff]  ;;  %525 = vst [vmem:[%s720_s16 + $0xa0] ss:$4 sm:$0xff] %v510_v11  ;;  %v512_v16 = vadd.f32 -103.53, %v496_v13 }
  0x18   : > { %v513_v17 = vadd.f32 -103.53, %v497_v14  ;;  %v498_v18 = vld [vmem:[%s715_s13 + $0x120] ss:$4 sm:$0xff]  ;;  %526 = vst [vmem:[%s720_s16 + $0xc0] ss:$4 sm:$0xff] %v511_v15 }
  0x19   : > { %v499_v19 = vld [vmem:[%s715_s13 + $0x140] ss:$4 sm:$0xff]  ;;  %527 = vst [vmem:[%s720_s16 + $0xe0] ss:$4 sm:$0xff] %v512_v16  ;;  %v514_v21 = vadd.f32 -103.53, %v498_v18 }
  0x1a   : > { %v500_v20 = vld [vmem:[%s715_s13 + $0x160] ss:$4 sm:$0xff]  ;;  %528 = vst [vmem:[%s720_s16 + $0x100] ss:$4 sm:$0xff] %v513_v17  ;;  %v515_v22 = vadd.f32 -103.53, %v499_v19 }
  0x1b   : > { %v516_v23 = vadd.f32 -103.53, %v500_v20  ;;  %v501_v24 = vld [vmem:[%s715_s13 + $0x180] ss:$4 sm:$0xff]  ;;  %529 = vst [vmem:[%s720_s16 + $0x120] ss:$4 sm:$0xff] %v514_v21 }
  0x1c   : > { %v502_v25 = vld [vmem:[%s715_s13 + $0x1a0] ss:$4 sm:$0xff]  ;;  %530 = vst [vmem:[%s720_s16 + $0x140] ss:$4 sm:$0xff] %v515_v22  ;;  %v517_v27 = vadd.f32 -103.53, %v501_v24 }
  0x1d   : > { %v503_v26 = vld [vmem:[%s715_s13 + $0x1c0] ss:$4 sm:$0xff]  ;;  %531 = vst [vmem:[%s720_s16 + $0x160] ss:$4 sm:$0xff] %v516_v23  ;;  %v518_v28 = vadd.f32 -103.53, %v502_v25 }
  0x1e   : > { %v519_v29 = vadd.f32 -103.53, %v503_v26  ;;  %v504_v30 = vld [vmem:[%s715_s13 + $0x1e0] ss:$4 sm:$0xff]  ;;  %532 = vst [vmem:[%s720_s16 + $0x180] ss:$4 sm:$0xff] %v517_v27 }
  0x1f   : > { %533 = vst [vmem:[%s720_s16 + $0x1a0] ss:$4 sm:$0xff] %v518_v28  ;;  %v520_v33 = vadd.f32 -103.53, %v504_v30  ;;  %v553_v35 = vadd.f32 -116.28, %v537_v32 }
  0x20   : > { %534 = vst [vmem:[%s720_s16 + $0x1c0] ss:$4 sm:$0xff] %v519_v29  ;;  %v538_v36 = vld [vmem:[%s715_s13 + $0x41] ss:$4 sm:$0xff]  ;;  %568 = vst [vmem:[%s720_s16 + $0x1] ss:$4 sm:$0xff] %v552_v34 }
  0x21   : > { %v539_v37 = vld [vmem:[%s715_s13 + $0x61] ss:$4 sm:$0xff]  ;;  %535 = vst [vmem:[%s720_s16 + $0x1e0] ss:$4 sm:$0xff] %v520_v33  ;;  %569 = vst [vmem:[%s720_s16 + $0x21] ss:$4 sm:$0xff] %v553_v35 }
  0x22   : > { %v540_v38 = vld [vmem:[%s715_s13 + $0x81] ss:$4 sm:$0xff]  ;;  %v554_v39 = vadd.f32 -116.28, %v538_v36  ;;  %v555_v40 = vadd.f32 -116.28, %v539_v37 }
  0x23   : > { %v556_v41 = vadd.f32 -116.28, %v540_v38  ;;  %v541_v42 = vld [vmem:[%s715_s13 + $0xa1] ss:$4 sm:$0xff]  ;;  %v600_v1 = vadd.f32 -123.675, %v584_v62 }
  0x24   : > { %v542_v43 = vld [vmem:[%s715_s13 + $0xc1] ss:$4 sm:$0xff]  ;;  %570 = vst [vmem:[%s720_s16 + $0x41] ss:$4 sm:$0xff] %v554_v39  ;;  %571 = vst [vmem:[%s720_s16 + $0x61] ss:$4 sm:$0xff] %v555_v40 }
  0x25   : > { %v543_v44 = vld [vmem:[%s715_s13 + $0xe1] ss:$4 sm:$0xff]  ;;  %572 = vst [vmem:[%s720_s16 + $0x81] ss:$4 sm:$0xff] %v556_v41  ;;  %v557_v45 = vadd.f32 -116.28, %v541_v42 }
  0x26   : > { %v558_v46 = vadd.f32 -116.28, %v542_v43  ;;  %v559_v47 = vadd.f32 -116.28, %v543_v44  ;;  %v544_v48 = vld [vmem:[%s715_s13 + $0x101] ss:$4 sm:$0xff] }
  0x27   : > { %v545_v49 = vld [vmem:[%s715_s13 + $0x121] ss:$4 sm:$0xff]  ;;  %573 = vst [vmem:[%s720_s16 + $0xa1] ss:$4 sm:$0xff] %v557_v45  ;;  %v560_v51 = vadd.f32 -116.28, %v544_v48 }
  0x28   : > { %v546_v50 = vld [vmem:[%s715_s13 + $0x141] ss:$4 sm:$0xff]  ;;  %574 = vst [vmem:[%s720_s16 + $0xc1] ss:$4 sm:$0xff] %v558_v46  ;;  %575 = vst [vmem:[%s720_s16 + $0xe1] ss:$4 sm:$0xff] %v559_v47 }
  0x29   : > { %v561_v52 = vadd.f32 -116.28, %v545_v49  ;;  %v562_v53 = vadd.f32 -116.28, %v546_v50  ;;  %v547_v54 = vld [vmem:[%s715_s13 + $0x161] ss:$4 sm:$0xff] }
  0x2a   : > { %v548_v55 = vld [vmem:[%s715_s13 + $0x181] ss:$4 sm:$0xff]  ;;  %576 = vst [vmem:[%s720_s16 + $0x101] ss:$4 sm:$0xff] %v560_v51  ;;  %v563_v57 = vadd.f32 -116.28, %v547_v54 }
  0x2b   : > { %v549_v56 = vld [vmem:[%s715_s13 + $0x1a1] ss:$4 sm:$0xff]  ;;  %577 = vst [vmem:[%s720_s16 + $0x121] ss:$4 sm:$0xff] %v561_v52  ;;  %578 = vst [vmem:[%s720_s16 + $0x141] ss:$4 sm:$0xff] %v562_v53 }
  0x2c   : > { %v564_v58 = vadd.f32 -116.28, %v548_v55  ;;  %v565_v59 = vadd.f32 -116.28, %v549_v56  ;;  %v550_v60 = vld [vmem:[%s715_s13 + $0x1c1] ss:$4 sm:$0xff] }
  0x2d   : > { %v551_v61 = vld [vmem:[%s715_s13 + $0x1e1] ss:$4 sm:$0xff]  ;;  %579 = vst [vmem:[%s720_s16 + $0x161] ss:$4 sm:$0xff] %v563_v57  ;;  %v566_v63 = vadd.f32 -116.28, %v550_v60 }
  0x2e   : > { %580 = vst [vmem:[%s720_s16 + $0x181] ss:$4 sm:$0xff] %v564_v58  ;;  %581 = vst [vmem:[%s720_s16 + $0x1a1] ss:$4 sm:$0xff] %v565_v59  ;;  %v567_v0 = vadd.f32 -116.28, %v551_v61 }
  0x2f   : > { %v585_v2 = vld [vmem:[%s715_s13 + $0x22] ss:$4 sm:$0xff]  ;;  %582 = vst [vmem:[%s720_s16 + $0x1c1] ss:$4 sm:$0xff] %v566_v63  ;;  %616 = vst [vmem:[%s720_s16 + $0x2] ss:$4 sm:$0xff] %v600_v1 }
  0x30   : > { %v586_v3 = vld [vmem:[%s715_s13 + $0x42] ss:$4 sm:$0xff]  ;;  %583 = vst [vmem:[%s720_s16 + $0x1e1] ss:$4 sm:$0xff] %v567_v0  ;;  %v601_v5 = vadd.f32 -123.675, %v585_v2 }
  0x31   : > { %v587_v4 = vld [vmem:[%s715_s13 + $0x62] ss:$4 sm:$0xff]  ;;  %v602_v6 = vadd.f32 -123.675, %v586_v3 }
  0x32   : > { %v603_v7 = vadd.f32 -123.675, %v587_v4  ;;  %v588_v8 = vld [vmem:[%s715_s13 + $0x82] ss:$4 sm:$0xff]  ;;  %617 = vst [vmem:[%s720_s16 + $0x22] ss:$4 sm:$0xff] %v601_v5 }
  0x33   : > { %v589_v9 = vld [vmem:[%s715_s13 + $0xa2] ss:$4 sm:$0xff]  ;;  %618 = vst [vmem:[%s720_s16 + $0x42] ss:$4 sm:$0xff] %v602_v6  ;;  %v604_v11 = vadd.f32 -123.675, %v588_v8 }
  0x34   : > { %v590_v10 = vld [vmem:[%s715_s13 + $0xc2] ss:$4 sm:$0xff]  ;;  %619 = vst [vmem:[%s720_s16 + $0x62] ss:$4 sm:$0xff] %v603_v7  ;;  %v605_v12 = vadd.f32 -123.675, %v589_v9 }
  0x35   : > { %v606_v13 = vadd.f32 -123.675, %v590_v10  ;;  %v591_v14 = vld [vmem:[%s715_s13 + $0xe2] ss:$4 sm:$0xff]  ;;  %620 = vst [vmem:[%s720_s16 + $0x82] ss:$4 sm:$0xff] %v604_v11 }
  0x36   : > { %v592_v15 = vld [vmem:[%s715_s13 + $0x102] ss:$4 sm:$0xff]  ;;  %621 = vst [vmem:[%s720_s16 + $0xa2] ss:$4 sm:$0xff] %v605_v12  ;;  %v607_v17 = vadd.f32 -123.675, %v591_v14 }
  0x37   : > { %v593_v16 = vld [vmem:[%s715_s13 + $0x122] ss:$4 sm:$0xff]  ;;  %622 = vst [vmem:[%s720_s16 + $0xc2] ss:$4 sm:$0xff] %v606_v13  ;;  %v608_v18 = vadd.f32 -123.675, %v592_v15 }
  0x38   : > { %v609_v19 = vadd.f32 -123.675, %v593_v16  ;;  %v594_v20 = vld [vmem:[%s715_s13 + $0x142] ss:$4 sm:$0xff]  ;;  %623 = vst [vmem:[%s720_s16 + $0xe2] ss:$4 sm:$0xff] %v607_v17 }
  0x39   : > { %v595_v21 = vld [vmem:[%s715_s13 + $0x162] ss:$4 sm:$0xff]  ;;  %624 = vst [vmem:[%s720_s16 + $0x102] ss:$4 sm:$0xff] %v608_v18  ;;  %v610_v23 = vadd.f32 -123.675, %v594_v20 }
  0x3a   : > { %v596_v22 = vld [vmem:[%s715_s13 + $0x182] ss:$4 sm:$0xff]  ;;  %625 = vst [vmem:[%s720_s16 + $0x122] ss:$4 sm:$0xff] %v609_v19  ;;  %v611_v24 = vadd.f32 -123.675, %v595_v21 }
  0x3b   : > { %v612_v25 = vadd.f32 -123.675, %v596_v22  ;;  %v597_v26 = vld [vmem:[%s715_s13 + $0x1a2] ss:$4 sm:$0xff]  ;;  %626 = vst [vmem:[%s720_s16 + $0x142] ss:$4 sm:$0xff] %v610_v23 }
  0x3c   : > { %v598_v27 = vld [vmem:[%s715_s13 + $0x1c2] ss:$4 sm:$0xff]  ;;  %627 = vst [vmem:[%s720_s16 + $0x162] ss:$4 sm:$0xff] %v611_v24  ;;  %v613_v29 = vadd.f32 -123.675, %v597_v26 }
  0x3d   : > { %v599_v28 = vld [vmem:[%s715_s13 + $0x1e2] ss:$4 sm:$0xff]  ;;  %628 = vst [vmem:[%s720_s16 + $0x182] ss:$4 sm:$0xff] %v612_v25  ;;  %v614_v30 = vadd.f32 -123.675, %v598_v27 }
  0x3e   : > { %v615_v31 = vadd.f32 -123.675, %v599_v28  ;;  %629 = vst [vmem:[%s720_s16 + $0x1a2] ss:$4 sm:$0xff] %v613_v29 }
  0x3f   : > { %630 = vst [vmem:[%s720_s16 + $0x1c2] ss:$4 sm:$0xff] %v614_v30 }
  0x40   : > { %631 = vst [vmem:[%s720_s16 + $0x1e2] ss:$4 sm:$0xff] %v615_v31 }
  0x41 PF: > { %s11_s8 = sadd.s32 1, %s682_s8   ;;  %s829_s6 = smov %s678_s7 }
  0x42   : > { %p8_p5 = scmp.ge.s32.totalorder %s11_s8, 4   ;;  %s830_s7 = smov %s832_s9 }
  0x44   :  { %10 = sbr.rel (!%p8_p5) target bundleno = 2 (0x2), region = 148 }

</bundles_post_ra>
